<compile_context>
chip_gen: v7x
topology: tpu7x:2x2x1
jax: 0.10.0
libtpu: 0.0.40
codegen_flags: <defaults>
</compile_context>

<pallas_src>
import jax
import jax.numpy as jnp
from jax import lax
from jax.experimental import pallas as pl
from jax.experimental.pallas import tpu as pltpu

_SUB = 256                           # lanes per inner sub-step (2 vregs wide)
_NT = (((1,), (1,)), ((), ()))       # contract dim 1 of both operands (A @ B^T)


def _cdiv(a, b):
    return (a + b - 1) // b


def _critic_kernel(obs_ref, w1_ref, b1_ref, w2_ref, b2_ref, w3_ref, b3_ref,
                   out_ref):
    """obs_ref: (TM, OBS) f32    w1: (H, OBS)  b1: (H, 1)
       w2: (H, H)  b2: (H, 1)    w3: (H, 1)    b3: (1,) in SMEM
       out_ref: (1, TM) f32 (lane-dense value row)."""
    n_sub = obs_ref.shape[0] // _SUB              # static

    # Resident operands: load once, reuse across the sub-chunk loop.
    w1 = w1_ref[...]
    b1 = b1_ref[...]
    w2 = w2_ref[...]
    b2 = b2_ref[...]
    w3 = w3_ref[...]
    b3 = b3_ref[0]

    def body(j, carry):
        off = pl.multiple_of(j * _SUB, _SUB)
        obs_sub = obs_ref[pl.ds(off, _SUB), :]    # (SUB, OBS) f32, natural layout

        # Layer 1: (H, OBS) x (SUB, OBS)^T -> (H, SUB) on the MXU (f32 acc).
        h1 = lax.dot_general(w1, obs_sub, _NT,
                             preferred_element_type=jnp.float32)
        h1 = jnp.maximum(h1 + b1, 0.0)            # f32 bias + ReLU (VPU)

        # Layer 2: (H, H) @ (H, SUB) -> (H, SUB) on the MXU.
        h2 = jnp.dot(w2, h1, preferred_element_type=jnp.float32)
        h2 = jnp.maximum(h2 + b2, 0.0)

        # Critic.last: Linear(H, 1) -> lane-dense (1, SUB) row
        # (column-broadcast multiply on VPU + sublane reduce on XLU).
        v = jnp.sum(h2 * w3, axis=0, keepdims=True) + b3
        out_ref[:, pl.ds(off, _SUB)] = v.astype(out_ref.dtype)
        return carry

    lax.fori_loop(0, n_sub, body, 0, unroll=True)


def critic_forward(obs, params, *, block_b=2048):
    """Critic forward: obs [B, obs_dim] f32 -> value [B, 1] f32.

    params in PyTorch nn.Linear (out_features, in_features) layout:
      w1 (H, obs_dim), b1 (H,), w2 (H, H), b2 (H,), w3 (1, H), b3 (1,)
    """
    w1, b1, w2, b2, w3, b3 = params
    B, obs_dim = obs.shape
    H = w1.shape[0]

    if obs.dtype != jnp.float32:
        obs = obs.astype(jnp.float32)

    # --- batch tiling --------------------------------------------------------
    n_sub_total = max(1, _cdiv(B, _SUB))            # 256-lane sub-chunks needed
    max_sub_per_tile = max(1, block_b // _SUB)
    n_tiles = _cdiv(n_sub_total, max_sub_per_tile)
    if n_tiles == 1 and n_sub_total >= 2:
        n_tiles = 2               # give both TensorCores work on dual-core chips
    elif n_tiles > 1 and n_tiles % 2:
        n_tiles += 1              # even tile count -> balanced 2-core split
    sub_per_tile = _cdiv(n_sub_total, n_tiles)
    tm = sub_per_tile * _SUB
    Bp = n_tiles * tm

    if Bp != B:
        # Only taken when the batch is not already tile-aligned; fused under jit.
        obs = jnp.pad(obs, ((0, Bp - B), (0, 0)))

    # --- small resident operands (reshape/cast once, fused under jit) --------
    w1c = w1.astype(jnp.float32)                    # (H, obs_dim)
    w2c = w2.astype(jnp.float32)                    # (H, H)
    b1c = b1.reshape(H, 1).astype(jnp.float32)      # (H, 1)
    b2c = b2.reshape(H, 1).astype(jnp.float32)      # (H, 1)
    w3c = w3.reshape(H, 1).astype(jnp.float32)      # (H, 1) column of last layer
    b3s = b3.reshape(1).astype(jnp.float32)         # (1,)   SMEM scalar

    flops = 2 * Bp * (obs_dim * H + H * H + H)
    bytes_accessed = (Bp * obs_dim * 4 + Bp * 4
                      + (w1c.size + w2c.size + b1c.size + b2c.size
                         + w3c.size + 1) * 4)

    out = pl.pallas_call(
        _critic_kernel,
        out_shape=jax.ShapeDtypeStruct((1, Bp), jnp.float32),
        grid_spec=pltpu.PrefetchScalarGridSpec(
            num_scalar_prefetch=0,
            grid=(n_tiles,),
            in_specs=[
                pl.BlockSpec((tm, obs_dim), lambda i: (i, 0)),      # obs (streams)
                pl.BlockSpec((H, obs_dim), lambda i: (0, 0)),       # w1 (resident)
                pl.BlockSpec((H, 1), lambda i: (0, 0)),             # b1 (resident)
                pl.BlockSpec((H, H), lambda i: (0, 0)),             # w2 (resident)
                pl.BlockSpec((H, 1), lambda i: (0, 0)),             # b2 (resident)
                pl.BlockSpec((H, 1), lambda i: (0, 0)),             # w3 (resident)
                pl.BlockSpec(memory_space=pltpu.MemorySpace.SMEM),  # b3 scalar
            ],
            out_specs=pl.BlockSpec((1, tm), lambda i: (0, i)),      # lane-dense
        ),
        compiler_params=pltpu.CompilerParams(
            dimension_semantics=("parallel",)),
        cost_estimate=pl.CostEstimate(flops=flops, transcendentals=0,
                                      bytes_accessed=bytes_accessed),
    )(obs, w1c, b1c, w2c, b2c, w3c, b3s)

    # Layout plumbing back to the module's [B, 1] output; fuses under the
    # caller's jit (no separate slice/reshape launch).
    return out[0, :B].reshape(B, 1)


def init_params(key, obs_dim=4, hidden=64):
    """Deterministic synthetic parameters, PyTorch nn.Linear layout (out, in)."""
    k1, k2, k3, k4, k5 = jax.random.split(key, 5)
    scale = 0.1
    w1 = scale * jax.random.normal(k1, (hidden, obs_dim), jnp.float32)
    b1 = 0.05 * jax.random.normal(k4, (hidden,), jnp.float32)
    w2 = scale * jax.random.normal(k2, (hidden, hidden), jnp.float32)
    b2 = 0.05 * jax.random.normal(k5, (hidden,), jnp.float32)
    w3 = scale * jax.random.normal(k3, (1, hidden), jnp.float32)   # nn.Linear(64, 1)
    b3 = jnp.zeros((1,), jnp.float32)
    return (w1, b1, w2, b2, w3, b3)


def _reference(obs, params):
    """Pure-JAX f32 reference matching the PyTorch Critic forward."""
    w1, b1, w2, b2, w3, b3 = params
    hp = jax.lax.Precision.HIGHEST
    h1 = jnp.maximum(jnp.dot(obs, w1.T, precision=hp) + b1, 0.0)
    h2 = jnp.maximum(jnp.dot(h1, w2.T, precision=hp) + b2, 0.0)
    return jnp.dot(h2, w3.T, precision=hp) + b3


if __name__ == "__main__":
    key = jax.random.PRNGKey(0)
    k_obs, k_par = jax.random.split(key)

    # CartPole: obs_dim = 4; preprocess MLP hidden = 64 (fixed by Linear(64, 1)).
    # batch = 1024 exercises 2 grid tiles (one per TensorCore on v7x) with
    # 2 unrolled 256-lane sub-chunks per tile.
    batch, obs_dim, hidden = 1024, 4, 64
    obs = jax.random.normal(k_obs, (batch, obs_dim), jnp.float32)
    params = init_params(k_par, obs_dim=obs_dim, hidden=hidden)

    fwd = jax.jit(critic_forward)
    value = fwd(obs, params)
    jax.block_until_ready(value)

    ref = _reference(obs, params)
    assert value.shape == (batch, 1), value.shape
    max_err = float(jnp.max(jnp.abs(value - ref)))
    assert jnp.allclose(value, ref, atol=2e-3, rtol=2e-3), max_err

    print("KERNEL_OK")
</pallas_src>

<mosaic_0001>
module attributes {stable_mosaic.version = 11 : i64} {
  func.func @_critic_kernel(%arg0: i32, %arg1: memref<512x4xf32, #tpu.memory_space<vmem>>, %arg2: memref<64x4xf32, #tpu.memory_space<vmem>>, %arg3: memref<64x1xf32, #tpu.memory_space<vmem>>, %arg4: memref<64x64xf32, #tpu.memory_space<vmem>>, %arg5: memref<64x1xf32, #tpu.memory_space<vmem>>, %arg6: memref<64x1xf32, #tpu.memory_space<vmem>>, %arg7: memref<1xf32, #tpu.memory_space<smem>>, %arg8: memref<1x512xf32, #tpu.memory_space<vmem>>) attributes {dimension_semantics = [#tpu.dimension_semantics<parallel>], iteration_bounds = array<i64: 2>, scalar_prefetch = 0 : i64, scratch_operands = 0 : i64, tpu.core_type = #tpu.core_type<tc>, window_params = [{transform_indices = @transform_0, window_bounds = array<i64: 512, 4>}, {pipeline_mode = #tpu.pipeline_mode<synchronous>, transform_indices = @transform_1, window_bounds = array<i64: 64, 4>}, {pipeline_mode = #tpu.pipeline_mode<synchronous>, transform_indices = @transform_2, window_bounds = array<i64: 64, 1>}, {pipeline_mode = #tpu.pipeline_mode<synchronous>, transform_indices = @transform_3, window_bounds = array<i64: 64, 64>}, {pipeline_mode = #tpu.pipeline_mode<synchronous>, transform_indices = @transform_4, window_bounds = array<i64: 64, 1>}, {pipeline_mode = #tpu.pipeline_mode<synchronous>, transform_indices = @transform_5, window_bounds = array<i64: 64, 1>}, {transform_indices = @transform_6, window_bounds = array<i64: 1>}, {transform_indices = @transform_7, window_bounds = array<i64: 1, 512>}]} {
    %c0 = arith.constant 0 : index
    %c0_0 = arith.constant 0 : index
    %0 = vector.load %arg2[%c0, %c0_0] : memref<64x4xf32, #tpu.memory_space<vmem>>, vector<64x4xf32>
    %c0_1 = arith.constant 0 : index
    %c0_2 = arith.constant 0 : index
    %1 = vector.load %arg3[%c0_1, %c0_2] : memref<64x1xf32, #tpu.memory_space<vmem>>, vector<64x1xf32>
    %c0_3 = arith.constant 0 : index
    %c0_4 = arith.constant 0 : index
    %2 = vector.load %arg4[%c0_3, %c0_4] : memref<64x64xf32, #tpu.memory_space<vmem>>, vector<64x64xf32>
    %c0_5 = arith.constant 0 : index
    %c0_6 = arith.constant 0 : index
    %3 = vector.load %arg5[%c0_5, %c0_6] : memref<64x1xf32, #tpu.memory_space<vmem>>, vector<64x1xf32>
    %c0_7 = arith.constant 0 : index
    %c0_8 = arith.constant 0 : index
    %4 = vector.load %arg6[%c0_7, %c0_8] : memref<64x1xf32, #tpu.memory_space<vmem>>, vector<64x1xf32>
    %c0_9 = arith.constant 0 : index
    %5 = memref.load %arg7[%c0_9] : memref<1xf32, #tpu.memory_space<smem>>
    %c0_i32 = arith.constant 0 : i32
    %c256_i32 = arith.constant 256 : i32
    %6 = arith.muli %c0_i32, %c256_i32 : i32
    %7 = tpu.assume_multiple %6, 256 : i32
    %8 = arith.index_cast %7 : i32 to index
    %c0_10 = arith.constant 0 : index
    %9 = vector.load %arg1[%8, %c0_10] : memref<512x4xf32, #tpu.memory_space<vmem>>, vector<256x4xf32>
    %cst = arith.constant dense<0.000000e+00> : vector<64x256xf32>
    %10 = tpu.matmul %0, %9, %cst {dimension_numbers = #tpu.dot_dimension_numbers<[1], [1], [0], [0], [0, 0, 1, 0], [], []>} : vector<64x4xf32>, vector<256x4xf32>, vector<64x256xf32> -> vector<64x256xf32>
    %11 = vector.broadcast %1 : vector<64x1xf32> to vector<64x256xf32>
    %12 = arith.addf %10, %11 : vector<64x256xf32>
    %cst_11 = arith.constant 0.000000e+00 : f32
    %13 = vector.broadcast %cst_11 : f32 to vector<64x256xf32>
    %14 = arith.maximumf %12, %13 : vector<64x256xf32>
    %cst_12 = arith.constant dense<0.000000e+00> : vector<64x256xf32>
    %15 = tpu.matmul %2, %14, %cst_12 {dimension_numbers = #tpu.dot_dimension_numbers<[1], [0], [0], [1], [0, 0, 1, 1], [], []>} : vector<64x64xf32>, vector<64x256xf32>, vector<64x256xf32> -> vector<64x256xf32>
    %16 = vector.broadcast %3 : vector<64x1xf32> to vector<64x256xf32>
    %17 = arith.addf %15, %16 : vector<64x256xf32>
    %cst_13 = arith.constant 0.000000e+00 : f32
    %18 = vector.broadcast %cst_13 : f32 to vector<64x256xf32>
    %19 = arith.maximumf %17, %18 : vector<64x256xf32>
    %20 = vector.broadcast %4 : vector<64x1xf32> to vector<64x256xf32>
    %21 = arith.mulf %19, %20 : vector<64x256xf32>
    %cst_14 = arith.constant dense<0.000000e+00> : vector<256xf32>
    %22 = vector.multi_reduction <add>, %21, %cst_14 [0] : vector<64x256xf32> to vector<256xf32>
    %23 = vector.shape_cast %22 : vector<256xf32> to vector<1x256xf32>
    %24 = vector.broadcast %5 : f32 to vector<1x256xf32>
    %25 = arith.addf %23, %24 : vector<1x256xf32>
    %c0_15 = arith.constant 0 : index
    %26 = arith.index_cast %7 : i32 to index
    %27 = vector.load %arg8[%c0_15, %26] : memref<1x512xf32, #tpu.memory_space<vmem>>, vector<1x256xf32>
    tpu.vector_store %arg8[%c0_15, %26], %25 {strides = array<i32>} : memref<1x512xf32, #tpu.memory_space<vmem>>, vector<1x256xf32>,
    %c1_i32 = arith.constant 1 : i32
    %c256_i32_16 = arith.constant 256 : i32
    %28 = arith.muli %c1_i32, %c256_i32_16 : i32
    %29 = tpu.assume_multiple %28, 256 : i32
    %30 = arith.index_cast %29 : i32 to index
    %c0_17 = arith.constant 0 : index
    %31 = vector.load %arg1[%30, %c0_17] : memref<512x4xf32, #tpu.memory_space<vmem>>, vector<256x4xf32>
    %cst_18 = arith.constant dense<0.000000e+00> : vector<64x256xf32>
    %32 = tpu.matmul %0, %31, %cst_18 {dimension_numbers = #tpu.dot_dimension_numbers<[1], [1], [0], [0], [0, 0, 1, 0], [], []>} : vector<64x4xf32>, vector<256x4xf32>, vector<64x256xf32> -> vector<64x256xf32>
    %33 = vector.broadcast %1 : vector<64x1xf32> to vector<64x256xf32>
    %34 = arith.addf %32, %33 : vector<64x256xf32>
    %cst_19 = arith.constant 0.000000e+00 : f32
    %35 = vector.broadcast %cst_19 : f32 to vector<64x256xf32>
    %36 = arith.maximumf %34, %35 : vector<64x256xf32>
    %cst_20 = arith.constant dense<0.000000e+00> : vector<64x256xf32>
    %37 = tpu.matmul %2, %36, %cst_20 {dimension_numbers = #tpu.dot_dimension_numbers<[1], [0], [0], [1], [0, 0, 1, 1], [], []>} : vector<64x64xf32>, vector<64x256xf32>, vector<64x256xf32> -> vector<64x256xf32>
    %38 = vector.broadcast %3 : vector<64x1xf32> to vector<64x256xf32>
    %39 = arith.addf %37, %38 : vector<64x256xf32>
    %cst_21 = arith.constant 0.000000e+00 : f32
    %40 = vector.broadcast %cst_21 : f32 to vector<64x256xf32>
    %41 = arith.maximumf %39, %40 : vector<64x256xf32>
    %42 = vector.broadcast %4 : vector<64x1xf32> to vector<64x256xf32>
    %43 = arith.mulf %41, %42 : vector<64x256xf32>
    %cst_22 = arith.constant dense<0.000000e+00> : vector<256xf32>
    %44 = vector.multi_reduction <add>, %43, %cst_22 [0] : vector<64x256xf32> to vector<256xf32>
    %45 = vector.shape_cast %44 : vector<256xf32> to vector<1x256xf32>
    %46 = vector.broadcast %5 : f32 to vector<1x256xf32>
    %47 = arith.addf %45, %46 : vector<1x256xf32>
    %c0_23 = arith.constant 0 : index
    %48 = arith.index_cast %29 : i32 to index
    %49 = vector.load %arg8[%c0_23, %48] : memref<1x512xf32, #tpu.memory_space<vmem>>, vector<1x256xf32>
    tpu.vector_store %arg8[%c0_23, %48], %47 {strides = array<i32>} : memref<1x512xf32, #tpu.memory_space<vmem>>, vector<1x256xf32>,
    %c2_i32 = arith.constant 2 : i32
    return
  }
  func.func @transform_0(%arg0: i32) -> (i32, i32) {
    %c0_i32 = arith.constant 0 : i32
    %c0_i32_0 = arith.constant 0 : i32
    return %arg0, %c0_i32 : i32, i32
  }
  func.func @transform_1(%arg0: i32) -> (i32, i32) {
    %c0_i32 = arith.constant 0 : i32
    %c0_i32_0 = arith.constant 0 : i32
    %c0_i32_1 = arith.constant 0 : i32
    return %c0_i32, %c0_i32_0 : i32, i32
  }
  func.func @transform_2(%arg0: i32) -> (i32, i32) {
    %c0_i32 = arith.constant 0 : i32
    %c0_i32_0 = arith.constant 0 : i32
    %c0_i32_1 = arith.constant 0 : i32
    return %c0_i32, %c0_i32_0 : i32, i32
  }
  func.func @transform_3(%arg0: i32) -> (i32, i32) {
    %c0_i32 = arith.constant 0 : i32
    %c0_i32_0 = arith.constant 0 : i32
    %c0_i32_1 = arith.constant 0 : i32
    return %c0_i32, %c0_i32_0 : i32, i32
  }
  func.func @transform_4(%arg0: i32) -> (i32, i32) {
    %c0_i32 = arith.constant 0 : i32
    %c0_i32_0 = arith.constant 0 : i32
    %c0_i32_1 = arith.constant 0 : i32
    return %c0_i32, %c0_i32_0 : i32, i32
  }
  func.func @transform_5(%arg0: i32) -> (i32, i32) {
    %c0_i32 = arith.constant 0 : i32
    %c0_i32_0 = arith.constant 0 : i32
    %c0_i32_1 = arith.constant 0 : i32
    return %c0_i32, %c0_i32_0 : i32, i32
  }
  func.func @transform_6(%arg0: i32) -> i32 {
    %c0_i32 = arith.constant 0 : i32
    %c0_i32_0 = arith.constant 0 : i32
    return %c0_i32 : i32
  }
  func.func @transform_7(%arg0: i32) -> (i32, i32) {
    %c0_i32 = arith.constant 0 : i32
    %c0_i32_0 = arith.constant 0 : i32
    return %c0_i32, %arg0 : i32, i32
  }
}

</mosaic_0001>

<bundles_post_ra>
// kernel: critic_forward.1
= control target key start
LH: loop header
LB: loop body
LE: loop exit
PB: predicated region body
PF: predicated region fallthrough
CT: control target
= control target key end

     0   :  { %s2672_s0 = inlined_call_operand.vmem [shape: f32[1024,4], index: 0, kind: input, shape index: {}]   ;;  %s2673_s1 = inlined_call_operand.vmem [shape: f32[64,4], index: 1, kind: input, shape index: {}]   ;;  %s2674_s2 = inlined_call_operand.vmem [shape: f32[64,1], index: 2, kind: input, shape index: {}]   ;;  %s2675_s3 = inlined_call_operand.vmem [shape: f32[64,64], index: 3, kind: input, shape index: {}]   ;;  %s2676_s4 = inlined_call_operand.vmem [shape: f32[64,1], index: 4, kind: input, shape index: {}]   ;;  %s2677_s5 = inlined_call_operand.vmem [shape: f32[64,1], index: 5, kind: input, shape index: {}]   ;;  %s2678_s6 = inlined_call_operand.<no memory space> [shape: f32[1], index: 6, kind: input, shape index: {}]   ;;  %s2679_s7 = inlined_call_operand.hbm [shape: f32[1,1024], index: 7, kind: output, shape index: {}]  }
   0x1   :  { %12 = sst [smem:[#allocation2]] %s2678_s6 }
   0x2   :  { %13 = vsyncpa [#allocation4], 0 }
   0x3   :  { %15 = vsyncpa [#allocation4 + $0x1], 0  ;;  %s2000_s26 = smov 0   ;;  %s2002_s27 = smov 0  }
   0x4   :  { %s2004_s28 = smov 0   ;;  %s2006_s29 = smov 0  }
   0x5 LB: > { %s1470_s6 = sadd.s32 4294967295, %s1951_s29   ;;  %s1471_s30 = sadd.s32 4294967294, %s1951_s29   ;;  %s1951_s29 = sphi %s2006_s29, %s2689_s29   ;;  %s1947_s28 = sphi %s2004_s28, %s2688_s28   ;;  %s1943_s27 = sphi %s2002_s27, %s2687_s27   ;;  %s1939_s26 = sphi %s2000_s26, %s2686_s26  }
   0x6   : > { %s2023_s8 = sadd.s32 1, %s1951_s29   ;;  %s180_s9 = sadd.s32 1, %s1947_s28 }
   0x7   : > { %s177_s10 = ssub.s32 %s1951_s29, %s2023_s8  ;;  %p190_p0 = scmp.ne.s32.totalorder %s1947_s28, %s1943_s27 }
   0x8   : > { %p178_p1 = scmp.eq.s32.totalorder %s177_s10, 0  ;;  %p191_p2 = scmp.eq.s32.totalorder %s1470_s6, 1 }
   0x9   : > { %p196_p3 = scmp.ne.s32.totalorder %s1943_s27, %s1939_s26  ;;  %p197_p4 = scmp.eq.s32.totalorder %s1471_s30, 1 }
   0xa   : > { %s2033_s11 = scalar_select %p178_p1, %s1947_s28, %s180_s9  }
   0xb   : > { %p2035_p5 = por %p191_p2, %p190_p0  ;;  %p2039_p6 = por %p197_p4, %p196_p3 }
   0xc   : > { %p1474_p7 = scmp.ge.s32.totalorder %s1951_s29, 1  ;;  %p242_p8 = scmp.lt.s32.totalorder %s1951_s29, 3 }
   0xe   : > { %p243_p9 = pnand %p1474_p7, %p242_p8 }
   0xf   : > { %s2045_s14 = sshll.u32 (!%p243_p9), %s1470_s6, 6  ;;  %vm394_vm0 = vcmask (!%p243_p9), 31744   ;;  %v2050_v0 = vld [vmem:[%s2673_s1] sm:$0xff] (!%p243_p9)  ;;  %v1953_v1 = vmov (!%p243_p9), 0   ;;  %v291_v3 = vld [vmem:[%s2674_s2 + $0x10] sm:$0xff] (!%p243_p9)  ;;  %v290_v4 = vld [vmem:[%s2674_s2 + $0x8] sm:$0xff] (!%p243_p9) }
  0x10   : > { %246 = sbr.rel (%p243_p9) target bundleno = 944 (0x3b0), region = 48  ;;  %p275_p10 = scmp.lt.s32.totalorder (!%p243_p9), %s2045_s14, 127  ;;  %1645 = vmatprep.mubr.msk.f32.mxu0 (!%p243_p9), %vm394_vm0, %v2050_v0  ;;  %1887 = vset.pattern.permute.xlu0 (!%p243_p9), %v1953_v1  ;;  %v289_v2 = vld [vmem:[%s2674_s2] sm:$0xff] (!%p243_p9)  ;;  %v292_v5 = vld [vmem:[%s2674_s2 + $0x18] sm:$0xff] (!%p243_p9)  ;;  %vm2075_vm1 = vmpackc.low (!%p243_p9), %vm394_vm0, %vm394_vm0  ;;  %vm684_vm2 = vcmask (!%p243_p9), 523264  }
  0x11   : > { %1888 = vset.pattern.permute.xlu1 (!%p243_p9), %v1953_v1  ;;  %356 = vperm.xlu0 (!%p243_p9), %1887, %v289_v2   ;;  %v293_v16 = vld [vmem:[%s2674_s2 + $0x20] sm:$0xff] (!%p243_p9)  ;;  %v294_v17 = vld [vmem:[%s2674_s2 + $0x28] sm:$0xff] (!%p243_p9)  ;;  %v295_v22 = vld [vmem:[%s2674_s2 + $0x30] sm:$0xff] (!%p243_p9)  ;;  %s271_s15 = sand.u32 (!%p243_p9), 1, %s1943_s27   ;;  %s2625_s21 = scalar_lea.hbm (!%p243_p9), %s2679_s7, %s2045_s14 }
  0x12   : > { %366 = vperm.xlu1 (!%p243_p9), %1888, %v291_v3   ;;  %v296_v23 = vld [vmem:[%s2674_s2 + $0x38] sm:$0xff] (!%p243_p9)  ;;  %v305_v26 = vld [vmem:[%s2676_s4] sm:$0xff] (!%p243_p9)  ;;  %v306_v27 = vld [vmem:[%s2676_s4 + $0x8] sm:$0xff] (!%p243_p9)  ;;  %s1475_s16 = sshll.u32 (!%p243_p9), %s271_s15, 2  ;;  %s1956_s24 = smov (!%p243_p9), [#allocation3]  }
  0x13   : > { %v307_v32 = vld [vmem:[%s2676_s4 + $0x10] sm:$0xff] (!%p243_p9)  ;;  %v308_v33 = vld [vmem:[%s2676_s4 + $0x18] sm:$0xff] (!%p243_p9)  ;;  %v313_v36 = vld [vmem:[%s2677_s5] sm:$0xff] (!%p243_p9)  ;;  %s1893_s25 = sshll.u32 (!%p243_p9), %s1956_s24, 4  ;;  %s1894_s25 = int_to_ptr.vmem [resolvable:$false] %s1893_s25 }
  0x14   : > { %v314_v37 = vld [vmem:[%s2677_s5 + $0x8] sm:$0xff] (!%p243_p9)  ;;  %v309_v42 = vld [vmem:[%s2676_s4 + $0x20] sm:$0xff] (!%p243_p9)  ;;  %v315_v43 = vld [vmem:[%s2677_s5 + $0x10] sm:$0xff] (!%p243_p9) }
  0x15   : > { %361 = vperm.xlu0 (!%p243_p9), %1887, %v290_v4   ;;  %v310_v46 = vld [vmem:[%s2676_s4 + $0x28] sm:$0xff] (!%p243_p9)  ;;  %v316_v47 = vld [vmem:[%s2677_s5 + $0x18] sm:$0xff] (!%p243_p9)  ;;  %v311_v52 = vld [vmem:[%s2676_s4 + $0x30] sm:$0xff] (!%p243_p9) }
  0x16   : > { %371 = vperm.xlu1 (!%p243_p9), %1888, %v292_v5   ;;  %v317_v53 = vld [vmem:[%s2677_s5 + $0x20] sm:$0xff] (!%p243_p9)  ;;  %v312_v56 = vld [vmem:[%s2676_s4 + $0x38] sm:$0xff] (!%p243_p9)  ;;  %v318_v57 = vld [vmem:[%s2677_s5 + $0x28] sm:$0xff] (!%p243_p9) }
  0x17   : > { %s276_s17 = scalar_select %p275_p10, %s2045_s14, 127  ;;  %v319_v62 = vld [vmem:[%s2677_s5 + $0x30] sm:$0xff]  ;;  %v320_v63 = vld [vmem:[%s2677_s5 + $0x38] sm:$0xff] }
  0x18   : > { %s1895_s14 = scalar_lea.vmem %s1894_s25, 128 }
  0x19   : > { %s1477_s22 = sshll.u32 %s276_s17, 3  ;;  %376 = vperm.xlu0 %1887, %v293_v16   ;;  %v2233_v16 = vld [vmem:[%s2673_s1 + $0x20] sm:$0xff]  ;;  %s2541_s17 = scalar_lea.vmem [#allocation3], %s1475_s16 }
  0x1a   : > { %s2071_s10 = scalar_lea.vmem %s2672_s0, %s1477_s22  ;;  %381 = vperm.xlu1 %1888, %v294_v17   ;;  %v2242_v17 = vld [vmem:[%s2673_s1 + $0x28] sm:$0xff]  ;;  %s1412_s18 = sshll.u32 %s2541_s17, 4  ;;  %s2627_s18 = int_to_ptr.vmem [resolvable:$true] %s1412_s18 }
  0x1b   : > { %v338_v7 = vld [vmem:[%s2071_s10 + $0x80] sm:$0xff]  ;;  %v339_v8 = vld [vmem:[%s2071_s10 + $0x88] sm:$0xff]  ;;  %v340_v12 = vld [vmem:[%s2071_s10 + $0x90] sm:$0xff]  ;;  %s1398_s22 = scalar_lea.sflag [#allocation4], %s271_s15  ;;  %s1889_s23 = scalar_lea.vmem %s2627_s18, 64 }
  0x1c   : > { %v322_v9 = vld [vmem:[%s2071_s10] sm:$0xff]  ;;  %v1709_v10 = vpack.c.bf16 %v339_v8, %v338_v7  ;;  %v323_v11 = vld [vmem:[%s2071_s10 + $0x8] sm:$0xff]  ;;  %v341_v13 = vld [vmem:[%s2071_s10 + $0x98] sm:$0xff]  ;;  %p1890_p11 = scmp.ne.s32.totalorder %s2627_s18, %s1889_s23  ;;  %p1896_p0 = scmp.lt.s32.totalorder %s2627_s18, %s1894_s25 }
  0x1d   : > { %v1712_v14 = vpack.c.bf16 %v323_v11, %v322_v9  ;;  %v1715_v15 = vpack.c.bf16 %v341_v13, %v340_v12  ;;  %v324_v18 = vld [vmem:[%s2071_s10 + $0x10] sm:$0xff]  ;;  %v325_v19 = vld [vmem:[%s2071_s10 + $0x18] sm:$0xff]  ;;  %v342_v20 = vld [vmem:[%s2071_s10 + $0xa0] sm:$0xff]  ;;  %386 = vperm.xlu0 %1887, %v295_v22   ;;  %p1897_p1 = scmp.lt.s32.totalorder %s1895_s14, %s1889_s23 }
  0x1e   : > { %1711 = vmatprep.subr.msk.bf16.mxu0 %vm2075_vm1, %v1709_v10  ;;  %v343_v21 = vld [vmem:[%s2071_s10 + $0xa8] sm:$0xff]  ;;  %v1718_v24 = vpack.c.bf16 %v325_v19, %v324_v18  ;;  %391 = vperm.xlu1 %1888, %v296_v23   ;;  %v326_v28 = vld [vmem:[%s2071_s10 + $0x20] sm:$0xff]  ;;  %v344_v30 = vld [vmem:[%s2071_s10 + $0xb0] sm:$0xff]  ;;  %p1891_p12 = pnand %p1890_p11, %p2035_p5 }
  0x1f   : > { %1714 = vmatpush3.bf16.xpose.msk.msra.mxu0 %vm2075_vm1, %v1712_v14  ;;  %v1721_v25 = vpack.c.bf16 %v343_v21, %v342_v20  ;;  %v327_v29 = vld [vmem:[%s2071_s10 + $0x28] sm:$0xff]  ;;  %v345_v31 = vld [vmem:[%s2071_s10 + $0xb8] sm:$0xff]  ;;  %v328_v38 = vld [vmem:[%s2071_s10 + $0x30] sm:$0xff]  ;;  %v1954_v20 = vmov 0.0   ;;  %p1898_p2 = por %p1897_p1, %p1896_p0 }
  0x20   : > { %1717 = vmatprep.subr.msk.bf16.mxu0 %vm2075_vm1, %v1715_v15  ;;  %v1724_v34 = vpack.c.bf16 %v327_v29, %v326_v28  ;;  %v1727_v35 = vpack.c.bf16 %v345_v31, %v344_v30  ;;  %v329_v39 = vld [vmem:[%s2071_s10 + $0x38] sm:$0xff]  ;;  %v346_v40 = vld [vmem:[%s2071_s10 + $0xc0] sm:$0xff]  ;;  %v347_v41 = vld [vmem:[%s2071_s10 + $0xc8] sm:$0xff]  ;;  %773 = vmatprep.mubr.f32.mxu1 %v1954_v20  ;;  %p1892_p13 = pneg %p1891_p12 }
  0x21   : > { %646 = vperm.xlu0 %1887, %v305_v26   ;;  %v1730_v44 = vpack.c.bf16 %v329_v39, %v328_v38  ;;  %v1733_v45 = vpack.c.bf16 %v347_v41, %v346_v40  ;;  %v330_v48 = vld [vmem:[%s2071_s10 + $0x40] sm:$0xff]  ;;  %v331_v49 = vld [vmem:[%s2071_s10 + $0x48] sm:$0xff]  ;;  %v348_v50 = vld [vmem:[%s2071_s10 + $0xd0] sm:$0xff] }
  0x22   : > { %651 = vperm.xlu1 %1888, %v306_v27   ;;  %v349_v51 = vld [vmem:[%s2071_s10 + $0xd8] sm:$0xff]  ;;  %v1736_v54 = vpack.c.bf16 %v331_v49, %v330_v48  ;;  %v332_v58 = vld [vmem:[%s2071_s10 + $0x50] sm:$0xff]  ;;  %v350_v60 = vld [vmem:[%s2071_s10 + $0xe0] sm:$0xff]  ;;  %p1899_p3 = pnand %p1898_p2, %p1892_p13 }
  0x23   : > { %v1739_v55 = vpack.c.bf16 %v349_v51, %v348_v50  ;;  %v333_v59 = vld [vmem:[%s2071_s10 + $0x58] sm:$0xff]  ;;  %v351_v61 = vld [vmem:[%s2071_s10 + $0xe8] sm:$0xff]  ;;  %v334_v3 = vld [vmem:[%s2071_s10 + $0x60] sm:$0xff] }
  0x24   : > { %v1742_v1 = vpack.c.bf16 %v333_v59, %v332_v58  ;;  %v1745_v2 = vpack.c.bf16 %v351_v61, %v350_v60  ;;  %v335_v4 = vld [vmem:[%s2071_s10 + $0x68] sm:$0xff]  ;;  %v352_v5 = vld [vmem:[%s2071_s10 + $0xf0] sm:$0xff]  ;;  %v353_v7 = vld [vmem:[%s2071_s10 + $0xf8] sm:$0xff] }
  0x25   : > { %656 = vperm.xlu0 %1887, %v307_v32   ;;  %v1748_v8 = vpack.c.bf16 %v335_v4, %v334_v3  ;;  %v1751_v9 = vpack.c.bf16 %v353_v7, %v352_v5  ;;  %v336_v10 = vld [vmem:[%s2071_s10 + $0x70] sm:$0xff]  ;;  %v337_v11 = vld [vmem:[%s2071_s10 + $0x78] sm:$0xff]  ;;  %v2206_v13 = vld [vmem:[%s2673_s1 + $0x8] sm:$0xff] }
  0x26   : > { %661 = vperm.xlu1 %1888, %v308_v33   ;;  %v1754_v12 = vpack.c.bf16 %v337_v11, %v336_v10  ;;  %v2215_v14 = vld [vmem:[%s2673_s1 + $0x10] sm:$0xff]  ;;  %v2224_v15 = vld [vmem:[%s2673_s1 + $0x18] sm:$0xff] }
  0x27   : > { %1720 = vmatpush3.bf16.xpose.msk.msra.mxu0 %vm2075_vm1, %v1718_v24  ;;  %v2251_v18 = vld [vmem:[%s2673_s1 + $0x30] sm:$0xff]  ;;  %v2260_v19 = vld [vmem:[%s2673_s1 + $0x38] sm:$0xff] }
  0x28   : > { %1723 = vmatprep.subr.msk.bf16.mxu0 %vm2075_vm1, %v1721_v25 }
  0x29   : > { %840 = vperm.xlu0 %1887, %v313_v36  }
  0x2a   : > { %845 = vperm.xlu1 %1888, %v314_v37  }
  0x2d   : > { %666 = vperm.xlu0 %1887, %v309_v42  }
  0x2e   : > { %850 = vperm.xlu1 %1888, %v315_v43  }
  0x2f   : > { %1726 = vmatpush3.bf16.xpose.msk.msra.mxu0 %vm2075_vm1, %v1724_v34 }
  0x30   : > { %1729 = vmatprep.subr.msk.bf16.mxu0 %vm2075_vm1, %v1727_v35 }
  0x31   : > { %671 = vperm.xlu0 %1887, %v310_v46  }
  0x32   : > { %855 = vperm.xlu1 %1888, %v316_v47  }
  0x35   : > { %676 = vperm.xlu0 %1887, %v311_v52  }
  0x36   : > { %860 = vperm.xlu1 %1888, %v317_v53  }
  0x37   : > { %1732 = vmatpush3.bf16.xpose.msk.msra.mxu0 %vm2075_vm1, %v1730_v44 }
  0x38   : > { %1735 = vmatprep.subr.msk.bf16.mxu0 %vm2075_vm1, %v1733_v45 }
  0x39   : > { %681 = vperm.xlu0 %1887, %v312_v56  }
  0x3a   : > { %865 = vperm.xlu1 %1888, %v318_v57  }
  0x3d   : > { %870 = vperm.xlu0 %1887, %v319_v62  }
  0x3e   : > { %875 = vperm.xlu1 %1888, %v320_v63  }
  0x3f   : > { %1738 = vmatpush3.bf16.xpose.msk.msra.mxu0 %vm2075_vm1, %v1736_v54 }
  0x40   : > { %1741 = vmatprep.subr.msk.bf16.mxu0 %vm2075_vm1, %v1739_v55 }
  0x47   : > { %1744 = vmatpush3.bf16.xpose.msk.msra.mxu0 %vm2075_vm1, %v1742_v1 }
  0x48   : > { %1747 = vmatprep.subr.msk.bf16.mxu0 %vm2075_vm1, %v1745_v2 }
  0x4f   : > { %1750 = vmatpush3.bf16.xpose.msk.msra.mxu0 %vm2075_vm1, %v1748_v8 }
  0x50   : > { %1753 = vmatprep.subr.msk.bf16.mxu0 %vm2075_vm1, %v1751_v9 }
  0x57   : > { %1756 = vmatpush3.bf16.xpose.msk.msra.mxu0 %vm2075_vm1, %v1754_v12 }
  0x5e   : > { %1646 = vmatmul.mubr.msk.f32.vlgmr.msra.gmra.mrb[0].mxu0 %vm394_vm0, %v2050_v0 }
  0x5f   : > { %1647 = vmatprep.mubr.msk.f32.mxu0 %vm394_vm0, %v2206_v13 }
  0x62   : > { %1648 = vmatmul.mubr.msk.f32.gmra.mrb[2].mxu0 %vm394_vm0, %v2206_v13 }
  0x63   : > { %1649 = vmatprep.mubr.msk.f32.mxu0 %vm394_vm0, %v2215_v14 }
  0x66   : > { %1650 = vmatmul.mubr.msk.f32.gmra.mrb[4].mxu0 %vm394_vm0, %v2215_v14 }
  0x67   : > { %1651 = vmatprep.mubr.msk.f32.mxu0 %vm394_vm0, %v2224_v15 }
  0x6a   : > { %1652 = vmatmul.mubr.msk.f32.gmra.mrb[6].mxu0 %vm394_vm0, %v2224_v15 }
  0x6b   : > { %1653 = vmatprep.mubr.msk.f32.mxu0 %vm394_vm0, %v2233_v16 }
  0x6e   : > { %1654 = vmatmul.mubr.msk.f32.gmra.mrb[8].mxu0 %vm394_vm0, %v2233_v16 }
  0x6f   : > { %1655 = vmatprep.mubr.msk.f32.mxu0 %vm394_vm0, %v2242_v17 }
  0x72   : > { %1656 = vmatmul.mubr.msk.f32.gmra.mrb[10].mxu0 %vm394_vm0, %v2242_v17 }
  0x73   : > { %1657 = vmatprep.mubr.msk.f32.mxu0 %vm394_vm0, %v2251_v18 }
  0x76   : > { %1658 = vmatmul.mubr.msk.f32.gmra.mrb[12].mxu0 %vm394_vm0, %v2251_v18 }
  0x77   : > { %1659 = vmatprep.mubr.msk.f32.mxu0 %vm394_vm0, %v2260_v19 }
  0x7a   : > { %1660 = vmatmul.mubr.msk.f32.gmra.mrb[14].mxu0 %vm394_vm0, %v2260_v19 }
  0x7b   : > { %1268 = vmatprep.mubr.f32.mxu0 %v1954_v20 }
  0x90   : > { %v2270_v21 = vpop.permute.xlu0 %356 }
  0x91   : > { %v2277_v30 = vpop.permute.xlu1 %366 }
  0x94   : > { %v2273_v25 = vpop.permute.xlu0 %361 }
  0x95   : > { %v2281_v41 = vpop.permute.xlu1 %371 }
  0x98   : > { %v2286_v54 = vpop.permute.xlu0 %376 }
  0x99   : > { %v2289_v57 = vpop.permute.xlu1 %381 }
  0x9c   : > { %v2294_v8 = vpop.permute.xlu0 %386 }
  0x9d   : > { %v2297_v11 = vpop.permute.xlu1 %391 }
  0xa1   : > { %v2464_v6 = vpop.permute.xlu1 %651 }
 0x131   : > { %v581_v22 = vpop.f32.mrb[0].mxu0 }
 0x132   : > { %v583_v23 = vpop.f32.mrb[1].mxu0  ;;  %v582_v24 = vadd.f32 %v581_v22, %v2270_v21 }
 0x133   : > { %v584_v26 = vadd.f32 %v583_v23, %v2270_v21 }
 0x134   : > { %v628_v32 = vmax.f32 %v582_v24, 0.0 }
 0x135   : > { %v587_v27 = vpop.f32.mrb[2].mxu0  ;;  %v629_v34 = vmax.f32 %v584_v26, 0.0 }
 0x136   : > { %v588_v28 = vadd.f32 %v587_v27, %v2273_v25  ;;  %v589_v29 = vpop.f32.mrb[3].mxu0 }
 0x137   : > { %v590_v31 = vadd.f32 %v589_v29, %v2273_v25  ;;  %v1542_v29 = vld [vmem:[%s2071_s10 + $0x180] sm:$0xff] }
 0x138   : > { %v630_v33 = vmax.f32 %v588_v28, 0.0 }
 0x139   : > { %v631_v35 = vmax.f32 %v590_v31, 0.0  ;;  %v593_v36 = vpop.f32.mrb[4].mxu0  ;;  %v1543_v31 = vld [vmem:[%s2071_s10 + $0x188] sm:$0xff] }
 0x13a   : > { %v595_v37 = vpop.f32.mrb[5].mxu0  ;;  %v1759_v38 = vpack.c.bf16 %v630_v33, %v628_v32  ;;  %v594_v40 = vadd.f32 %v593_v36, %v2277_v30  ;;  %v1773_v36 = vpack.c.bf16 %v1543_v31, %v1542_v29  ;;  %v1537_v29 = vld [vmem:[%s2071_s10 + $0x158] sm:$0xff]  ;;  %v1554_v31 = vld [vmem:[%s2071_s10 + $0x1e0] sm:$0xff] }
 0x13b   : > { %v1757_v39 = vpack.c.bf16 %v631_v35, %v629_v34  ;;  %v596_v42 = vadd.f32 %v595_v37, %v2277_v30  ;;  %v2307_v37 = vld [vmem:[%s2675_s3] sm:$0xff] }
 0x13c   : > { %v632_v47 = vmax.f32 %v594_v40, 0.0  ;;  %v1544_v40 = vld [vmem:[%s2071_s10 + $0x190] sm:$0xff] }
 0x13d   : > { %v599_v43 = vpop.f32.mrb[6].mxu0  ;;  %1758 = vmatprep.subr.bf16.mxu1 %v1757_v39  ;;  %v633_v49 = vmax.f32 %v596_v42, 0.0  ;;  %v1527_v39 = vld [vmem:[%s2071_s10 + $0x108] sm:$0xff]  ;;  %v1545_v42 = vld [vmem:[%s2071_s10 + $0x198] sm:$0xff] }
 0x13e   : > { %v600_v44 = vadd.f32 %v599_v43, %v2281_v41  ;;  %v601_v45 = vpop.f32.mrb[7].mxu0  ;;  %1760 = vmatpush1.bf16.msra.mxu1 %v1759_v38  ;;  %v1526_v38 = vld [vmem:[%s2071_s10 + $0x100] sm:$0xff]  ;;  %v2321_v43 = vld [vmem:[%s2675_s3 + $0x8] sm:$0xff] }
 0x13f   : > { %v602_v46 = vadd.f32 %v601_v45, %v2281_v41  ;;  %v1779_v45 = vpack.c.bf16 %v1545_v42, %v1544_v40 }
 0x140   : > { %v634_v48 = vmax.f32 %v600_v44, 0.0  ;;  %v1776_v44 = vpack.c.bf16 %v1527_v39, %v1526_v38  ;;  %v1556_v38 = vld [vmem:[%s2071_s10 + $0x1f0] sm:$0xff]  ;;  %v1557_v39 = vld [vmem:[%s2071_s10 + $0x1f8] sm:$0xff] }
 0x141   : > { %v635_v50 = vmax.f32 %v602_v46, 0.0  ;;  %v605_v51 = vpop.f32.mrb[8].mxu0  ;;  %v2329_v46 = vld [vmem:[%s2675_s3 + $0x10] sm:$0xff]  ;;  %v1815_v42 = vpack.c.bf16 %v1557_v39, %v1556_v38 }
 0x142   : > { %v1763_v52 = vpack.c.bf16 %v634_v48, %v632_v47  ;;  %v607_v53 = vpop.f32.mrb[9].mxu0  ;;  %v606_v56 = vadd.f32 %v605_v51, %v2286_v54  ;;  %v1528_v47 = vld [vmem:[%s2071_s10 + $0x110] sm:$0xff]  ;;  %v1529_v48 = vld [vmem:[%s2071_s10 + $0x118] sm:$0xff] }
 0x143   : > { %v1761_v55 = vpack.c.bf16 %v635_v50, %v633_v49  ;;  %v608_v58 = vadd.f32 %v607_v53, %v2286_v54  ;;  %v1546_v49 = vld [vmem:[%s2071_s10 + $0x1a0] sm:$0xff]  ;;  %v1547_v50 = vld [vmem:[%s2071_s10 + $0x1a8] sm:$0xff]  ;;  %v2345_v51 = vld [vmem:[%s2675_s3 + $0x18] sm:$0xff] }
 0x144   : > { %v636_v63 = vmax.f32 %v606_v56, 0.0  ;;  %v1785_v53 = vpack.c.bf16 %v1547_v50, %v1546_v49  ;;  %v1530_v56 = vld [vmem:[%s2071_s10 + $0x120] sm:$0xff] }
 0x145   : > { %v611_v59 = vpop.f32.mrb[10].mxu0  ;;  %1762 = vmatprep.subr.bf16.mxu1 %v1761_v55  ;;  %v637_v2 = vmax.f32 %v608_v58, 0.0  ;;  %v2353_v55 = vld [vmem:[%s2675_s3 + $0x20] sm:$0xff]  ;;  %v1531_v58 = vld [vmem:[%s2071_s10 + $0x128] sm:$0xff] }
 0x146   : > { %v612_v60 = vadd.f32 %v611_v59, %v2289_v57  ;;  %v613_v61 = vpop.f32.mrb[11].mxu0  ;;  %1764 = vmatpush1.bf16.msra.mxu1 %v1763_v52  ;;  %v1782_v52 = vpack.c.bf16 %v1529_v48, %v1528_v47  ;;  %v1548_v59 = vld [vmem:[%s2071_s10 + $0x1b0] sm:$0xff] }
 0x147   : > { %v614_v62 = vadd.f32 %v613_v61, %v2289_v57  ;;  %v2369_v61 = vld [vmem:[%s2675_s3 + $0x28] sm:$0xff] }
 0x148   : > { %v638_v1 = vmax.f32 %v612_v60, 0.0  ;;  %v1549_v60 = vld [vmem:[%s2071_s10 + $0x1b8] sm:$0xff] }
 0x149   : > { %v639_v3 = vmax.f32 %v614_v62, 0.0  ;;  %v617_v4 = vpop.f32.mrb[12].mxu0  ;;  %v1788_v62 = vpack.c.bf16 %v1531_v58, %v1530_v56 }
 0x14a   : > { %v1767_v5 = vpack.c.bf16 %v638_v1, %v636_v63  ;;  %v619_v7 = vpop.f32.mrb[13].mxu0  ;;  %v618_v10 = vadd.f32 %v617_v4, %v2294_v8  ;;  %v1791_v63 = vpack.c.bf16 %v1549_v60, %v1548_v59  ;;  %v2377_v1 = vld [vmem:[%s2675_s3 + $0x30] sm:$0xff]  ;;  %v1550_v4 = vld [vmem:[%s2071_s10 + $0x1c0] sm:$0xff] }
 0x14b   : > { %v1765_v9 = vpack.c.bf16 %v639_v3, %v637_v2  ;;  %v620_v12 = vadd.f32 %v619_v7, %v2294_v8  ;;  %v1532_v2 = vld [vmem:[%s2071_s10 + $0x130] sm:$0xff]  ;;  %v1533_v3 = vld [vmem:[%s2071_s10 + $0x138] sm:$0xff] }
 0x14c   : > { %v640_v27 = vmax.f32 %v618_v10, 0.0  ;;  %v2393_v7 = vld [vmem:[%s2675_s3 + $0x38] sm:$0xff] }
 0x14d   : > { %v623_v22 = vpop.f32.mrb[14].mxu0  ;;  %1766 = vmatprep.subr.bf16.mxu1 %v1765_v9  ;;  %v641_v32 = vmax.f32 %v620_v12, 0.0  ;;  %v1794_v9 = vpack.c.bf16 %v1533_v3, %v1532_v2  ;;  %v1534_v12 = vld [vmem:[%s2071_s10 + $0x140] sm:$0xff] }
 0x14e   : > { %v624_v23 = vadd.f32 %v623_v22, %v2297_v11  ;;  %v625_v24 = vpop.f32.mrb[15].mxu0  ;;  %1768 = vmatpush1.bf16.msra.mxu1 %v1767_v5  ;;  %v1551_v5 = vld [vmem:[%s2071_s10 + $0x1c8] sm:$0xff] }
 0x14f   : > { %v626_v26 = vadd.f32 %v625_v24, %v2297_v11  ;;  %v1797_v10 = vpack.c.bf16 %v1551_v5, %v1550_v4  ;;  %v1535_v22 = vld [vmem:[%s2071_s10 + $0x148] sm:$0xff]  ;;  %v1553_v24 = vld [vmem:[%s2071_s10 + $0x1d8] sm:$0xff] }
 0x150   : > { %v642_v28 = vmax.f32 %v624_v23, 0.0  ;;  %v1552_v23 = vld [vmem:[%s2071_s10 + $0x1d0] sm:$0xff] }
 0x151   : > { %v643_v33 = vmax.f32 %v626_v26, 0.0  ;;  %v1800_v26 = vpack.c.bf16 %v1535_v22, %v1534_v12 }
 0x152   : > { %v1771_v34 = vpack.c.bf16 %v642_v28, %v640_v27  ;;  %v1803_v27 = vpack.c.bf16 %v1553_v24, %v1552_v23  ;;  %v1536_v28 = vld [vmem:[%s2071_s10 + $0x150] sm:$0xff] }
 0x153   : > { %v1769_v35 = vpack.c.bf16 %v643_v33, %v641_v32  ;;  %v1555_v32 = vld [vmem:[%s2071_s10 + $0x1e8] sm:$0xff]  ;;  %v1806_v33 = vpack.c.bf16 %v1537_v29, %v1536_v28 }
 0x155   : > { %1770 = vmatprep.subr.bf16.mxu1 %v1769_v35  ;;  %v1538_v35 = vld [vmem:[%s2071_s10 + $0x160] sm:$0xff] }
 0x156   : > { %1772 = vmatpush1.bf16.msra.mxu1 %v1771_v34  ;;  %v1809_v34 = vpack.c.bf16 %v1555_v32, %v1554_v31 }
 0x157   : > { %1775 = vmatprep.subr.msk.bf16.mxu1 %vm2075_vm1, %v1773_v36  ;;  %v1539_v36 = vld [vmem:[%s2071_s10 + $0x168] sm:$0xff] }
 0x158   : > { %v1812_v40 = vpack.c.bf16 %v1539_v36, %v1538_v35 }
 0x159   : > { %1518 = vmatmul.mubr.msk.f32.vlgmr.msra.gmra.mrb[0].mxu1 %vm684_vm2, %v2307_v37 }
 0x15a   : > { %779 = vmatprep.mubr.f32.mxu1 %v1954_v20 }
 0x15d   : > { %1519 = vmatmul.mubr.msk.f32.gmra.mrb[2].mxu1 %vm684_vm2, %v2321_v43 }
 0x15e   : > { %785 = vmatprep.mubr.f32.mxu1 %v1954_v20 }
 0x15f   : > { %1778 = vmatpush3.bf16.xpose.msk.msra.mxu1 %vm2075_vm1, %v1776_v44  ;;  %v1540_v44 = vld [vmem:[%s2071_s10 + $0x170] sm:$0xff] }
 0x160   : > { %1781 = vmatprep.subr.msk.bf16.mxu1 %vm2075_vm1, %v1779_v45  ;;  %v1541_v45 = vld [vmem:[%s2071_s10 + $0x178] sm:$0xff]  ;;  %s321_s10 = sld [smem:[#allocation2]] }
 0x161   : > { %1520 = vmatmul.mubr.msk.f32.gmra.mrb[4].mxu1 %vm684_vm2, %v2329_v46  ;;  %v1818_v47 = vpack.c.bf16 %v1541_v45, %v1540_v44 }
 0x162   : > { %791 = vmatprep.mubr.f32.mxu1 %v1954_v20 }
 0x165   : > { %1521 = vmatmul.mubr.msk.f32.gmra.mrb[6].mxu1 %vm684_vm2, %v2345_v51 }
 0x166   : > { %797 = vmatprep.mubr.f32.mxu1 %v1954_v20 }
 0x167   : > { %1784 = vmatpush3.bf16.xpose.msk.msra.mxu1 %vm2075_vm1, %v1782_v52 }
 0x168   : > { %1787 = vmatprep.subr.msk.bf16.mxu1 %vm2075_vm1, %v1785_v53 }
 0x169   : > { %1522 = vmatmul.mubr.msk.f32.gmra.mrb[8].mxu1 %vm684_vm2, %v2353_v55 }
 0x16a   : > { %803 = vmatprep.mubr.f32.mxu1 %v1954_v20 }
 0x16d   : > { %1523 = vmatmul.mubr.msk.f32.gmra.mrb[10].mxu1 %vm684_vm2, %v2369_v61 }
 0x16e   : > { %809 = vmatprep.mubr.f32.mxu1 %v1954_v20 }
 0x16f   : > { %1790 = vmatpush3.bf16.xpose.msk.msra.mxu1 %vm2075_vm1, %v1788_v62 }
 0x170   : > { %1793 = vmatprep.subr.msk.bf16.mxu1 %vm2075_vm1, %v1791_v63 }
 0x171   : > { %1524 = vmatmul.mubr.msk.f32.gmra.mrb[12].mxu1 %vm684_vm2, %v2377_v1 }
 0x172   : > { %815 = vmatprep.mubr.f32.mxu1 %v1954_v20 }
 0x175   : > { %1525 = vmatmul.mubr.msk.f32.gmra.mrb[14].mxu1 %vm684_vm2, %v2393_v7 }
 0x176   : > { %1693 = vmatprep.mubr.msk.f32.mxu1 %vm394_vm0, %v2050_v0 }
 0x177   : > { %1796 = vmatpush3.bf16.xpose.msk.msra.mxu1 %vm2075_vm1, %v1794_v9 }
 0x178   : > { %1799 = vmatprep.subr.msk.bf16.mxu1 %vm2075_vm1, %v1797_v10 }
 0x17f   : > { %1802 = vmatpush3.bf16.xpose.msk.msra.mxu1 %vm2075_vm1, %v1800_v26 }
 0x180   : > { %1805 = vmatprep.subr.msk.bf16.mxu1 %vm2075_vm1, %v1803_v27 }
 0x187   : > { %1808 = vmatpush3.bf16.xpose.msk.msra.mxu1 %vm2075_vm1, %v1806_v33 }
 0x188   : > { %1811 = vmatprep.subr.msk.bf16.mxu1 %vm2075_vm1, %v1809_v34 }
 0x18f   : > { %1814 = vmatpush3.bf16.xpose.msk.msra.mxu1 %vm2075_vm1, %v1812_v40 }
 0x190   : > { %1817 = vmatprep.subr.msk.bf16.mxu1 %vm2075_vm1, %v1815_v42 }
 0x197   : > { %1820 = vmatpush3.bf16.xpose.msk.msra.mxu1 %vm2075_vm1, %v1818_v47 }
 0x19e   : > { %1694 = vmatmul.mubr.msk.f32.vlgmr.msra.gmra.mrb[16].mxu1 %vm394_vm0, %v2050_v0  ;;  %v2462_v0 = vpop.permute.xlu0 %646 }
 0x19f   : > { %1695 = vmatprep.mubr.msk.f32.mxu1 %vm394_vm0, %v2206_v13 }
 0x1a2   : > { %1696 = vmatmul.mubr.msk.f32.gmra.mrb[18].mxu1 %vm394_vm0, %v2206_v13  ;;  %v2466_v13 = vpop.permute.xlu0 %656 }
 0x1a3   : > { %1697 = vmatprep.mubr.msk.f32.mxu1 %vm394_vm0, %v2215_v14 }
 0x1a6   : > { %1698 = vmatmul.mubr.msk.f32.gmra.mrb[20].mxu1 %vm394_vm0, %v2215_v14  ;;  %v2468_v14 = vpop.permute.xlu1 %661 }
 0x1a7   : > { %1699 = vmatprep.mubr.msk.f32.mxu1 %vm394_vm0, %v2224_v15 }
 0x1aa   : > { %1700 = vmatmul.mubr.msk.f32.gmra.mrb[22].mxu1 %vm394_vm0, %v2224_v15  ;;  %v2470_v15 = vpop.permute.xlu0 %840 }
 0x1ab   : > { %1701 = vmatprep.mubr.msk.f32.mxu1 %vm394_vm0, %v2233_v16 }
 0x1ae   : > { %1702 = vmatmul.mubr.msk.f32.gmra.mrb[24].mxu1 %vm394_vm0, %v2233_v16  ;;  %v2472_v16 = vpop.permute.xlu1 %845  ;;  %v2476_v49 = vpop.permute.xlu0 %666 }
 0x1af   : > { %1703 = vmatprep.mubr.msk.f32.mxu1 %vm394_vm0, %v2242_v17 }
 0x1b2   : > { %1704 = vmatmul.mubr.msk.f32.gmra.mrb[26].mxu1 %vm394_vm0, %v2242_v17  ;;  %v2479_v58 = vpop.permute.xlu1 %850  ;;  %v2485_v10 = vpop.permute.xlu0 %671 }
 0x1b3   : > { %1705 = vmatprep.mubr.msk.f32.mxu1 %vm394_vm0, %v2251_v18 }
 0x1b6   : > { %1706 = vmatmul.mubr.msk.f32.gmra.mrb[28].mxu1 %vm394_vm0, %v2251_v18  ;;  %v2490_v27 = vpop.permute.xlu1 %855  ;;  %v2496_v40 = vpop.permute.xlu0 %676 }
 0x1b7   : > { %1707 = vmatprep.mubr.msk.f32.mxu1 %vm394_vm0, %v2260_v19 }
 0x1ba   : > { %1708 = vmatmul.mubr.msk.f32.gmra.mrb[30].mxu1 %vm394_vm0, %v2260_v19 }
 0x1bb   : > { %1304 = vmatprep.mubr.f32.mxu1 %v1954_v20 }
 0x22c   : > { %v775_v17 = vpop.f32.mrb[0].mxu1 }
 0x22d   : > { %v776_v18 = vadd.f32 %v775_v17, %v2462_v0  ;;  %v777_v48 = vpop.f32.mrb[1].mxu1 }
 0x22e   : > { %v778_v19 = vadd.f32 %v777_v48, %v2462_v0  ;;  %v2500_v48 = vpop.permute.xlu1 %860 }
 0x22f   : > { %v822_v52 = vmax.f32 %v776_v18, 0.0 }
 0x230   : > { %v781_v50 = vpop.f32.mrb[2].mxu1  ;;  %v823_v59 = vmax.f32 %v778_v19, 0.0 }
 0x231   : > { %v782_v53 = vadd.f32 %v781_v50, %v2464_v6  ;;  %v783_v56 = vpop.f32.mrb[3].mxu1  ;;  %v878_v3 = vmul.f32 %v2470_v15, %v822_v52 }
 0x232   : > { %v784_v60 = vadd.f32 %v783_v56, %v2464_v6  ;;  %v879_v12 = vmul.f32 %v2470_v15, %v823_v59 }
 0x233   : > { %v824_v62 = vmax.f32 %v782_v53, 0.0 }
 0x234   : > { %v825_v63 = vmax.f32 %v784_v60, 0.0  ;;  %v787_v2 = vpop.f32.mrb[4].mxu1 }
 0x235   : > { %v880_v4 = vmul.f32 %v2472_v16, %v824_v62  ;;  %v788_v5 = vadd.f32 %v787_v2, %v2466_v13  ;;  %v789_v9 = vpop.f32.mrb[5].mxu1 }
 0x236   : > { %v881_v22 = vmul.f32 %v2472_v16, %v825_v63  ;;  %v790_v23 = vadd.f32 %v789_v9, %v2466_v13 }
 0x237   : > { %v894_v24 = vadd.f32 %v880_v4, %v878_v3  ;;  %v826_v26 = vmax.f32 %v788_v5, 0.0  ;;  %v2506_v3 = vpop.permute.xlu0 %681 }
 0x238   : > { %v907_v28 = vadd.f32 %v881_v22, %v879_v12  ;;  %v827_v29 = vmax.f32 %v790_v23, 0.0  ;;  %v793_v31 = vpop.f32.mrb[6].mxu1  ;;  %v2510_v22 = vpop.permute.xlu1 %865 }
 0x239   : > { %v882_v32 = vmul.f32 %v2479_v58, %v826_v26  ;;  %v794_v33 = vadd.f32 %v793_v31, %v2468_v14  ;;  %v795_v34 = vpop.f32.mrb[7].mxu1 }
 0x23a   : > { %v883_v35 = vmul.f32 %v2479_v58, %v827_v29  ;;  %v796_v36 = vadd.f32 %v795_v34, %v2468_v14 }
 0x23b   : > { %v895_v38 = vadd.f32 %v894_v24, %v882_v32  ;;  %v828_v39 = vmax.f32 %v794_v33, 0.0 }
 0x23c   : > { %v908_v42 = vadd.f32 %v907_v28, %v883_v35  ;;  %v829_v44 = vmax.f32 %v796_v36, 0.0  ;;  %v799_v45 = vpop.f32.mrb[8].mxu1  ;;  %v2516_v36 = vpop.permute.xlu0 %870 }
 0x23d   : > { %v884_v47 = vmul.f32 %v2490_v27, %v828_v39  ;;  %v800_v17 = vadd.f32 %v799_v45, %v2476_v49  ;;  %v801_v18 = vpop.f32.mrb[9].mxu1 }
 0x23e   : > { %v885_v19 = vmul.f32 %v2490_v27, %v829_v44  ;;  %v802_v50 = vadd.f32 %v801_v18, %v2476_v49 }
 0x23f   : > { %v896_v52 = vadd.f32 %v895_v38, %v884_v47  ;;  %v830_v53 = vmax.f32 %v800_v17, 0.0 }
 0x240   : > { %v909_v56 = vadd.f32 %v908_v42, %v885_v19  ;;  %v831_v59 = vmax.f32 %v802_v50, 0.0  ;;  %v805_v60 = vpop.f32.mrb[10].mxu1 }
 0x241   : > { %v886_v62 = vmul.f32 %v2500_v48, %v830_v53  ;;  %v806_v63 = vadd.f32 %v805_v60, %v2485_v10  ;;  %v807_v2 = vpop.f32.mrb[11].mxu1 }
 0x242   : > { %v887_v4 = vmul.f32 %v2500_v48, %v831_v59  ;;  %v808_v5 = vadd.f32 %v807_v2, %v2485_v10 }
 0x243   : > { %v897_v9 = vadd.f32 %v896_v52, %v886_v62  ;;  %v832_v12 = vmax.f32 %v806_v63, 0.0  ;;  %v2522_v52 = vpop.permute.xlu1 %875 }
 0x244   : > { %v910_v23 = vadd.f32 %v909_v56, %v887_v4  ;;  %v833_v24 = vmax.f32 %v808_v5, 0.0  ;;  %v811_v26 = vpop.f32.mrb[12].mxu1 }
 0x245   : > { %v888_v28 = vmul.f32 %v2510_v22, %v832_v12  ;;  %v812_v29 = vadd.f32 %v811_v26, %v2496_v40  ;;  %v813_v31 = vpop.f32.mrb[13].mxu1 }
 0x246   : > { %v889_v32 = vmul.f32 %v2510_v22, %v833_v24  ;;  %v814_v33 = vadd.f32 %v813_v31, %v2496_v40  ;;  %v1955_v24 = vmov 1966171168  }
 0x247   : > { %v898_v34 = vadd.f32 %v897_v9, %v888_v28  ;;  %v834_v35 = vmax.f32 %v812_v29, 0.0  ;;  %v927_v26 = vunpack.c.l.s4 %v1955_v24  ;;  %v929_v28 = vlaneseq }
 0x248   : > { %v911_v38 = vadd.f32 %v910_v23, %v889_v32  ;;  %v835_v39 = vmax.f32 %v814_v33, 0.0  ;;  %v817_v42 = vpop.f32.mrb[14].mxu1  ;;  %v2526_v33 = vstv %s321_s10 }
 0x249   : > { %v890_v44 = vmul.f32 %v2516_v36, %v834_v35  ;;  %v818_v45 = vadd.f32 %v817_v42, %v2506_v3  ;;  %v819_v47 = vpop.f32.mrb[15].mxu1  ;;  %v928_v35 = vunpack.c.0.s8 %v927_v26  ;;  %vm2536_vm3 = vcmp.lt.s32.totalorder %v929_v28, 256 }
 0x24a   : > { %v891_v17 = vmul.f32 %v2516_v36, %v835_v39  ;;  %v820_v18 = vadd.f32 %v819_v47, %v2506_v3 }
 0x24b   : > { %v899_v19 = vadd.f32 %v898_v34, %v890_v44  ;;  %v836_v50 = vmax.f32 %v818_v45, 0.0 }
 0x24c   : > { %v912_v53 = vadd.f32 %v911_v38, %v891_v17  ;;  %v837_v56 = vmax.f32 %v820_v18, 0.0  ;;  %v930_v38 = vshrl.u32 %v929_v28, 7 }
 0x24d   : > { %v892_v59 = vmul.f32 %v2522_v52, %v836_v50 }
 0x24e   : > { %v893_v60 = vmul.f32 %v2522_v52, %v837_v56  ;;  %v2531_v47 = vsub.s32 %v928_v35, %v930_v38 }
 0x24f   : > { %v900_v62 = vadd.f32 %v899_v19, %v892_v59 }
 0x250   : > { %v913_v63 = vadd.f32 %v912_v53, %v893_v60 }
 0x251   : > { %v901_v2 = vrot.slane %v900_v62, 4 }
 0x252   : > { %v914_v4 = vrot.slane %v913_v63, 4 }
 0x253   : > { %v902_v5 = vadd.f32 %v901_v2, %v900_v62 }
 0x254   : > { %v915_v9 = vadd.f32 %v914_v4, %v913_v63 }
 0x255   : > { %v903_v12 = vrot.slane %v902_v5, 2 }
 0x256   : > { %v916_v23 = vrot.slane %v915_v9, 2 }
 0x257   : > { %v904_v29 = vadd.f32 %v903_v12, %v902_v5 }
 0x258   : > { %v917_v31 = vadd.f32 %v916_v23, %v915_v9 }
 0x259   : > { %v905_v32 = vrot.slane %v904_v29, 1 }
 0x25a   : > { %v918_v34 = vrot.slane %v917_v31, 1 }
 0x25b   : > { %v906_v39 = vadd.f32 %v905_v32, %v904_v29 }
 0x25c   : > { %v919_v42 = vadd.f32 %v918_v34, %v917_v31 }
 0x25d   : > { %v921_v44 = vadd.f32 %v2526_v33, %v906_v39 }
 0x25e   : > { %v922_v45 = vadd.f32 %v2526_v33, %v919_v42 }
 0x260   : > { %v925_v17 = vcombine.low %v921_v44, %v922_v45 }
 0x262   : > { %v932_v18 = vrot.slane %v925_v17, %v2531_v47 }
 0x264   : > { %v939_v50 = vrot.slane %v932_v18, %v2531_v47 }
 0x266   : > { %945 = vst.msk [vmem:[%s2541_s17] sm:$0x3] %vm2536_vm3, %v939_v50 }
 0x271   : > { %v1141_v53 = vpop.f32.mrb[16].mxu1 }
 0x272   : > { %v1143_v56 = vpop.f32.mrb[17].mxu1  ;;  %v1142_v59 = vadd.f32 %v1141_v53, %v2270_v21 }
 0x273   : > { %v1144_v60 = vadd.f32 %v1143_v56, %v2270_v21 }
 0x274   : > { %v1188_v5 = vmax.f32 %v1142_v59, 0.0 }
 0x275   : > { %v1147_v62 = vpop.f32.mrb[18].mxu1  ;;  %v1189_v12 = vmax.f32 %v1144_v60, 0.0 }
 0x276   : > { %v1148_v63 = vadd.f32 %v1147_v62, %v2273_v25  ;;  %v1149_v2 = vpop.f32.mrb[19].mxu1 }
 0x277   : > { %v1150_v4 = vadd.f32 %v1149_v2, %v2273_v25 }
 0x278   : > { %v1190_v9 = vmax.f32 %v1148_v63, 0.0 }
 0x279   : > { %v1191_v23 = vmax.f32 %v1150_v4, 0.0  ;;  %v1153_v24 = vpop.f32.mrb[20].mxu1 }
 0x27a   : > { %v1823_v26 = vpack.c.bf16 %v1190_v9, %v1188_v5  ;;  %v1155_v28 = vpop.f32.mrb[21].mxu1  ;;  %v1154_v31 = vadd.f32 %v1153_v24, %v2277_v30 }
 0x27b   : > { %v1821_v29 = vpack.c.bf16 %v1191_v23, %v1189_v12  ;;  %v1156_v32 = vadd.f32 %v1155_v28, %v2277_v30 }
 0x27c   : > { %v1192_v38 = vmax.f32 %v1154_v31, 0.0 }
 0x27d   : > { %v1159_v34 = vpop.f32.mrb[22].mxu1  ;;  %1822 = vmatprep.subr.bf16.mxu0 %v1821_v29  ;;  %1837 = vmatprep.subr.bf16.mxu1 %v1821_v29  ;;  %v1193_v42 = vmax.f32 %v1156_v32, 0.0 }
 0x27e   : > { %v1160_v21 = vadd.f32 %v1159_v34, %v2281_v41  ;;  %v1161_v35 = vpop.f32.mrb[23].mxu1  ;;  %1824 = vmatpush1.bf16.msra.mxu0 %v1823_v26  ;;  %1841 = vmatpush1.bf16.msra.mxu1 %v1823_v26 }
 0x27f   : > { %v1162_v25 = vadd.f32 %v1161_v35, %v2281_v41 }
 0x280   : > { %v1194_v39 = vmax.f32 %v1160_v21, 0.0 }
 0x281   : > { %v1195_v44 = vmax.f32 %v1162_v25, 0.0  ;;  %v1165_v45 = vpop.f32.mrb[24].mxu1 }
 0x282   : > { %v1827_v17 = vpack.c.bf16 %v1194_v39, %v1192_v38  ;;  %v1167_v18 = vpop.f32.mrb[25].mxu1  ;;  %v1166_v30 = vadd.f32 %v1165_v45, %v2286_v54 }
 0x283   : > { %v1825_v50 = vpack.c.bf16 %v1195_v44, %v1193_v42  ;;  %v1168_v53 = vadd.f32 %v1167_v18, %v2286_v54 }
 0x284   : > { %v1196_v62 = vmax.f32 %v1166_v30, 0.0 }
 0x285   : > { %v1171_v56 = vpop.f32.mrb[26].mxu1  ;;  %1826 = vmatprep.subr.bf16.mxu0 %v1825_v50  ;;  %1838 = vmatprep.subr.bf16.mxu1 %v1825_v50  ;;  %v1197_v2 = vmax.f32 %v1168_v53, 0.0 }
 0x286   : > { %v1172_v59 = vadd.f32 %v1171_v56, %v2289_v57  ;;  %v1173_v60 = vpop.f32.mrb[27].mxu1  ;;  %1828 = vmatpush1.bf16.msra.mxu0 %v1827_v17  ;;  %1842 = vmatpush1.bf16.msra.mxu1 %v1827_v17 }
 0x287   : > { %v1174_v41 = vadd.f32 %v1173_v60, %v2289_v57 }
 0x288   : > { %v1198_v63 = vmax.f32 %v1172_v59, 0.0 }
 0x289   : > { %v1199_v4 = vmax.f32 %v1174_v41, 0.0  ;;  %v1177_v5 = vpop.f32.mrb[28].mxu1 }
 0x28a   : > { %v1831_v9 = vpack.c.bf16 %v1198_v63, %v1196_v62  ;;  %v1179_v12 = vpop.f32.mrb[29].mxu1  ;;  %v1178_v54 = vadd.f32 %v1177_v5, %v2294_v8 }
 0x28b   : > { %v1829_v23 = vpack.c.bf16 %v1199_v4, %v1197_v2  ;;  %v1180_v24 = vadd.f32 %v1179_v12, %v2294_v8 }
 0x28c   : > { %v1200_v31 = vmax.f32 %v1178_v54, 0.0 }
 0x28d   : > { %v1183_v26 = vpop.f32.mrb[30].mxu1  ;;  %1830 = vmatprep.subr.bf16.mxu0 %v1829_v23  ;;  %1839 = vmatprep.subr.bf16.mxu1 %v1829_v23  ;;  %v1201_v34 = vmax.f32 %v1180_v24, 0.0 }
 0x28e   : > { %v1184_v28 = vadd.f32 %v1183_v26, %v2297_v11  ;;  %v1185_v29 = vpop.f32.mrb[31].mxu1  ;;  %1832 = vmatpush1.bf16.msra.mxu0 %v1831_v9  ;;  %1843 = vmatpush1.bf16.msra.mxu1 %v1831_v9 }
 0x28f   : > { %v1186_v57 = vadd.f32 %v1185_v29, %v2297_v11 }
 0x290   : > { %v1202_v32 = vmax.f32 %v1184_v28, 0.0 }
 0x291   : > { %v1203_v21 = vmax.f32 %v1186_v57, 0.0 }
 0x292   : > { %v1835_v35 = vpack.c.bf16 %v1202_v32, %v1200_v31 }
 0x293   : > { %v1833_v25 = vpack.c.bf16 %v1203_v21, %v1201_v34 }
 0x295   : > { %1834 = vmatprep.subr.bf16.mxu0 %v1833_v25  ;;  %1840 = vmatprep.subr.bf16.mxu1 %v1833_v25 }
 0x296   : > { %1836 = vmatpush1.bf16.msra.mxu0 %v1835_v35  ;;  %1844 = vmatpush1.bf16.msra.mxu1 %v1835_v35 }
 0x299   : > { %1598 = vmatmul.mubr.msk.f32.vlgmr.msra.gmra.mrb[16].mxu0 %vm684_vm2, %v2307_v37  ;;  %1604 = vmatmul.mubr.msk.f32.vlgmr.msra.gmra.mrb[32].mxu1 %vm684_vm2, %v2377_v1 }
 0x29a   : > { %1274 = vmatprep.mubr.f32.mxu0 %v1954_v20  ;;  %1310 = vmatprep.mubr.f32.mxu1 %v1954_v20 }
 0x29d   : > { %1599 = vmatmul.mubr.msk.f32.gmra.mrb[18].mxu0 %vm684_vm2, %v2321_v43  ;;  %1605 = vmatmul.mubr.msk.f32.gmra.mrb[34].mxu1 %vm684_vm2, %v2393_v7 }
 0x29e   : > { %1280 = vmatprep.mubr.f32.mxu0 %v1954_v20 }
 0x2a1   : > { %1600 = vmatmul.mubr.msk.f32.gmra.mrb[20].mxu0 %vm684_vm2, %v2329_v46 }
 0x2a2   : > { %1286 = vmatprep.mubr.f32.mxu0 %v1954_v20 }
 0x2a5   : > { %1601 = vmatmul.mubr.msk.f32.gmra.mrb[22].mxu0 %vm684_vm2, %v2345_v51 }
 0x2a6   : > { %1292 = vmatprep.mubr.f32.mxu0 %v1954_v20 }
 0x2a9   : > { %1602 = vmatmul.mubr.msk.f32.gmra.mrb[24].mxu0 %vm684_vm2, %v2353_v55 }
 0x2aa   : > { %1298 = vmatprep.mubr.f32.mxu0 %v1954_v20 }
 0x2ad   : > { %1603 = vmatmul.mubr.msk.f32.gmra.mrb[26].mxu0 %vm684_vm2, %v2369_v61 }
 0x36c   : > { %v1270_v8 = vpop.f32.mrb[16].mxu0  ;;  %v1306_v11 = vpop.f32.mrb[32].mxu1 }
 0x36d   : > { %v1271_v37 = vadd.f32 %v1270_v8, %v2462_v0  ;;  %v1272_v43 = vpop.f32.mrb[17].mxu0  ;;  %v1308_v46 = vpop.f32.mrb[33].mxu1  ;;  %v1307_v31 = vadd.f32 %v1306_v11, %v2496_v40 }
 0x36e   : > { %v1273_v1 = vadd.f32 %v1272_v43, %v2462_v0 }
 0x36f   : > { %v1317_v38 = vmax.f32 %v1271_v37, 0.0 }
 0x370   : > { %v1276_v7 = vpop.f32.mrb[18].mxu0  ;;  %v1312_v51 = vpop.f32.mrb[34].mxu1  ;;  %v1318_v44 = vmax.f32 %v1273_v1, 0.0  ;;  %v1329_v1 = vmax.f32 %v1307_v31, 0.0 }
 0x371   : > { %v1277_v39 = vadd.f32 %v1276_v7, %v2464_v6  ;;  %v1278_v42 = vpop.f32.mrb[19].mxu0  ;;  %v1314_v55 = vpop.f32.mrb[35].mxu1  ;;  %v1333_v18 = vmul.f32 %v1317_v38, %v2470_v15  ;;  %v1313_v25 = vadd.f32 %v1312_v51, %v2506_v3 }
 0x372   : > { %v1279_v20 = vadd.f32 %v1278_v42, %v2464_v6  ;;  %v1334_v53 = vmul.f32 %v1318_v44, %v2470_v15 }
 0x373   : > { %v1319_v45 = vmax.f32 %v1277_v39, 0.0  ;;  %v1331_v42 = vmax.f32 %v1313_v25, 0.0 }
 0x374   : > { %v1320_v61 = vmax.f32 %v1279_v20, 0.0  ;;  %v1282_v17 = vpop.f32.mrb[20].mxu0 }
 0x375   : > { %v1335_v50 = vmul.f32 %v1319_v45, %v2472_v16  ;;  %v1283_v30 = vadd.f32 %v1282_v17, %v2466_v13  ;;  %v1284_v0 = vpop.f32.mrb[21].mxu0  ;;  %v1345_v45 = vmul.f32 %v1329_v1, %v2516_v36 }
 0x376   : > { %v1336_v56 = vmul.f32 %v1320_v61, %v2472_v16  ;;  %v1285_v59 = vadd.f32 %v1284_v0, %v2466_v13 }
 0x377   : > { %v1349_v60 = vadd.f32 %v1335_v50, %v1333_v18  ;;  %v1321_v41 = vmax.f32 %v1283_v30, 0.0 }
 0x378   : > { %v1362_v62 = vadd.f32 %v1336_v56, %v1334_v53  ;;  %v1322_v6 = vmax.f32 %v1285_v59, 0.0  ;;  %v1288_v63 = vpop.f32.mrb[22].mxu0 }
 0x379   : > { %v1337_v2 = vmul.f32 %v1321_v41, %v2479_v58  ;;  %v1289_v4 = vadd.f32 %v1288_v63, %v2468_v14  ;;  %v1290_v5 = vpop.f32.mrb[23].mxu0 }
 0x37a   : > { %v1338_v9 = vmul.f32 %v1322_v6, %v2479_v58  ;;  %v1291_v12 = vadd.f32 %v1290_v5, %v2468_v14  ;;  %v1309_v14 = vadd.f32 %v1308_v46, %v2496_v40 }
 0x37b   : > { %v1350_v23 = vadd.f32 %v1349_v60, %v1337_v2  ;;  %v1323_v15 = vmax.f32 %v1289_v4, 0.0 }
 0x37c   : > { %v1363_v54 = vadd.f32 %v1362_v62, %v1338_v9  ;;  %v1324_v16 = vmax.f32 %v1291_v12, 0.0  ;;  %v1294_v24 = vpop.f32.mrb[24].mxu0  ;;  %v1330_v40 = vmax.f32 %v1309_v14, 0.0 }
 0x37d   : > { %v1339_v13 = vmul.f32 %v1323_v15, %v2490_v27  ;;  %v1295_v26 = vadd.f32 %v1294_v24, %v2476_v49  ;;  %v1296_v28 = vpop.f32.mrb[25].mxu0 }
 0x37e   : > { %v1340_v29 = vmul.f32 %v1324_v16, %v2490_v27  ;;  %v1297_v57 = vadd.f32 %v1296_v28, %v2476_v49  ;;  %v1315_v27 = vadd.f32 %v1314_v55, %v2506_v3  ;;  %v1346_v3 = vmul.f32 %v1330_v40, %v2516_v36 }
 0x37f   : > { %v1351_v32 = vadd.f32 %v1350_v23, %v1339_v13  ;;  %v1325_v58 = vmax.f32 %v1295_v26, 0.0 }
 0x380   : > { %v1364_v34 = vadd.f32 %v1363_v54, %v1340_v29  ;;  %v1326_v21 = vmax.f32 %v1297_v57, 0.0  ;;  %v1300_v35 = vpop.f32.mrb[26].mxu0  ;;  %v1332_v44 = vmax.f32 %v1315_v27, 0.0 }
 0x381   : > { %v1341_v8 = vmul.f32 %v1325_v58, %v2500_v48  ;;  %v1301_v37 = vadd.f32 %v1300_v35, %v2485_v10  ;;  %v1302_v43 = vpop.f32.mrb[27].mxu0 }
 0x382   : > { %v1342_v49 = vmul.f32 %v1326_v21, %v2500_v48  ;;  %v1303_v11 = vadd.f32 %v1302_v43, %v2485_v10  ;;  %v1347_v10 = vmul.f32 %v1331_v42, %v2522_v52  ;;  %v1348_v17 = vmul.f32 %v1332_v44, %v2522_v52 }
 0x383   : > { %v1352_v7 = vadd.f32 %v1351_v32, %v1341_v8  ;;  %v1327_v38 = vmax.f32 %v1301_v37, 0.0 }
 0x384   : > { %v1365_v46 = vadd.f32 %v1364_v34, %v1342_v49  ;;  %v1328_v39 = vmax.f32 %v1303_v11, 0.0 }
 0x385   : > { %v1343_v51 = vmul.f32 %v1327_v38, %v2510_v22 }
 0x386   : > { %v1344_v20 = vmul.f32 %v1328_v39, %v2510_v22 }
 0x387   : > { %v1353_v61 = vadd.f32 %v1352_v7, %v1343_v51 }
 0x388   : > { %v1366_v48 = vadd.f32 %v1365_v46, %v1344_v20 }
 0x389   : > { %v1354_v55 = vadd.f32 %v1353_v61, %v1345_v45 }
 0x38a   : > { %v1367_v18 = vadd.f32 %v1366_v48, %v1346_v3 }
 0x38b   : > { %v1355_v50 = vadd.f32 %v1354_v55, %v1347_v10 }
 0x38c   : > { %v1368_v30 = vadd.f32 %v1367_v18, %v1348_v17 }
 0x38d   : > { %v1356_v0 = vrot.slane %v1355_v50, 4 }
 0x38e   : > { %v1369_v53 = vrot.slane %v1368_v30, 4 }
 0x38f   : > { %v1357_v56 = vadd.f32 %v1356_v0, %v1355_v50 }
 0x390   : > { %v1370_v22 = vadd.f32 %v1369_v53, %v1368_v30 }
 0x391   : > { %v1358_v59 = vrot.slane %v1357_v56, 2 }
 0x392   : > { %v1371_v60 = vrot.slane %v1370_v22, 2 }
 0x393   : > { %v1359_v36 = vadd.f32 %v1358_v59, %v1357_v56 }
 0x394   : > { %v1372_v41 = vadd.f32 %v1371_v60, %v1370_v22 }
 0x395   : > { %v1360_v62 = vrot.slane %v1359_v36, 1 }
 0x396   : > { %v1373_v6 = vrot.slane %v1372_v41, 1 }
 0x397   : > { %v1361_v63 = vadd.f32 %v1360_v62, %v1359_v36 }
 0x398   : > { %v1374_v52 = vadd.f32 %v1373_v6, %v1372_v41 }
 0x399   : > { %v1375_v2 = vadd.f32 %v1361_v63, %v2526_v33 }
 0x39a   : > { %v1376_v4 = vadd.f32 %v1374_v52, %v2526_v33 }
 0x39c   : > { %v1379_v5 = vcombine.low %v1375_v2, %v1376_v4 }
 0x39e   : > { %v1386_v9 = vrot.slane %v1379_v5, %v2531_v47 }
 0x3a0   : > { %v1393_v12 = vrot.slane %v1386_v9, %v2531_v47 }
 0x3a2   : > { %1606 = vst.msk [vmem:[%s2541_s17 + $0x2] sm:$0x3] %vm2536_vm3, %v1393_v12 }
 0x3a3   : > { %1902 = shalt.err (!%p1899_p3)
}
 0x3a4   : > { %s1903_s6 = scalar_lea.hbm %s2625_s21, 64  ;;  %s1907_s10 = scalar_lea.hbm %s2679_s7, 128 }
 0x3a5   : > { %p1904_p4 = scmp.ne.s32.totalorder %s2625_s21, %s1903_s6  ;;  %p1908_p9 = scmp.lt.u32.totalorder %s2625_s21, %s2679_s7 }
 0x3a6   : > { %p1909_p10 = scmp.lt.u32.totalorder %s1907_s10, %s1903_s6  ;;  %p1911_p12 = scmp.lt.u32.totalorder %s1903_s6, %s2625_s21 }
 0x3a7   : > { %p1905_p7 = pnand %p1904_p4, %p2035_p5 }
 0x3a8   : > { %p1910_p11 = por %p1909_p10, %p1908_p9 }
 0x3a9   : > { %p1906_p8 = pneg %p1905_p7 }
 0x3aa   : > { %p1912_p13 = por %p1911_p12, %p1910_p11 }
 0x3ac   : > { %p1913_p0 = pnand %p1912_p13, %p1906_p8 }
 0x3ae   : > { %1916 = shalt.err (!%p1913_p0)
}
 0x3af   : > { %1845 = dma.vmem_to_hbm [thread:$0]  (%p2035_p5), %s2627_s18, 64, %s2625_s21, %s1398_s22  }
 0x3b0 PF: > { %p1851_p1 = scmp.ge.s32.totalorder %s1951_s29, 2  ;;  %s1424_s17 = sand.u32 1, %s1939_s26  }
 0x3b1   : > { %s1425_s19 = scalar_lea.sflag [#allocation4], %s1424_s17 }
 0x3b2   : > { %p1848_p2 = pnand %p1851_p1, %p2039_p6 }
 0x3b4   : > { %1934 = dma.done.wait (!%p1848_p2), %s1425_s19, 64  }
 0x3b5   : > { %1936 = vsyncadd (!%p1848_p2), %s1425_s19, 4294967232  ;;  %p18_p3 = scmp.ge.s32.totalorder %s2023_s8, 4   ;;  %s2686_s26 = smov %s1943_s27 }
 0x3b6   : > { %s2687_s27 = smov %s1947_s28  ;;  %s2688_s28 = smov %s2033_s11 }
 0x3b7   : > { %s2689_s29 = smov %s2023_s8  ;;  %20 = sbr.rel (!%p18_p3) target bundleno = 5 (0x5), region = 85 }
 0x3be   :  { %1430 = vsyncpa [#allocation4], 1 }
 0x3bf   :  { %1432 = vsyncpa [#allocation4 + $0x1], 1 }

</bundles_post_ra>
